<compile_context>
chip_gen: v6e
topology: v6e:2x2x1
jax: 0.10.0
libtpu: 0.0.40
codegen_flags: <defaults>
</compile_context>

<pallas_src>
import functools

import jax
import jax.numpy as jnp
from jax.experimental import pallas as pl
from jax.experimental.pallas import tpu as pltpu

_LANES = 128


def _round_up(n, m):
    return ((n + m - 1) // m) * m


@functools.lru_cache(maxsize=1)
def _num_batch_tiles():
    """2 batch tiles on v7x (2 TensorCores / chip); 1 on single-TC chips (v5e/v6e)."""
    try:
        kind = jax.devices()[0].device_kind.lower()
    except Exception:
        kind = ""
    return 2 if ("v7" in kind or "7x" in kind) else 1


def actor_kernel(x_ref, w1_ref, b1_ref, w2_ref, b2_ref, w3_ref, b3_ref, out_ref):
    # fc1 + ReLU  (bf16 MXU matmul, f32 accumulate, f32 elementwise)
    h1 = jnp.dot(x_ref[...], w1_ref[...], preferred_element_type=jnp.float32)
    h1 = jnp.maximum(h1 + b1_ref[...], 0.0)
    # fc2 + ReLU
    h2 = jnp.dot(h1.astype(jnp.bfloat16), w2_ref[...],
                 preferred_element_type=jnp.float32)
    h2 = jnp.maximum(h2 + b2_ref[...], 0.0)
    # fc3 + tanh (output padded to a lane-dense 128-wide block)
    h3 = jnp.dot(h2.astype(jnp.bfloat16), w3_ref[...],
                 preferred_element_type=jnp.float32)
    out_ref[...] = jnp.tanh(h3 + b3_ref[...]).astype(out_ref.dtype)


def prepare_actor_params(params):
    """One-time preprocessing (call once, NOT per forward):
    pad state dim -> 128 and action dim -> 128 with zeros, cast weights to bf16
    (MXU dtype) and biases to f32 (VPU path). Weights are [in, out]."""
    w1, b1 = params["fc1"]
    w2, b2 = params["fc2"]
    w3, b3 = params["fc3"]
    S, H1 = w1.shape
    H2 = w2.shape[1]
    A = w3.shape[1]
    S_pad = _round_up(S, _LANES)   # lane-dense x loads, fuller MXU K for fc1
    A_pad = _round_up(A, _LANES)   # lane-dense (unmasked) fc3 stores

    w1p = jnp.zeros((S_pad, H1), jnp.bfloat16).at[:S, :].set(w1.astype(jnp.bfloat16))
    w2b = w2.astype(jnp.bfloat16)
    w3p = jnp.zeros((H2, A_pad), jnp.bfloat16).at[:, :A].set(w3.astype(jnp.bfloat16))
    b1f = jnp.asarray(b1, jnp.float32).reshape(1, H1)
    b2f = jnp.asarray(b2, jnp.float32).reshape(1, H2)
    b3f = jnp.zeros((1, A_pad), jnp.float32).at[:, :A].set(
        jnp.asarray(b3, jnp.float32).reshape(1, A))
    return {"w1": w1p, "b1": b1f, "w2": w2b, "b2": b2f, "w3": w3p, "b3": b3f}


def actor_forward_padded(x, prep):
    """Core forward. Returns the padded (Bp, 128) f32 output slab; consumers that
    tolerate padding should use this inside their own jit to skip the slice."""
    w1, b1 = prep["w1"], prep["b1"]
    w2, b2 = prep["w2"], prep["b2"]
    w3, b3 = prep["w3"], prep["b3"]

    B, S = x.shape
    S_pad, H1 = w1.shape
    H2 = w2.shape[1]
    A_pad = w3.shape[1]

    # grid=(1,) on 1-TC chips (v5e/v6e); 2 parallel batch tiles on v7x.
    num_tiles = _num_batch_tiles()
    Bp = _round_up(max(B, 16), 16 * num_tiles)
    tb = Bp // num_tiles

    # bf16 cast + zero-pad of the activation stream (single small fused op per call)
    xb = jnp.zeros((Bp, S_pad), jnp.bfloat16).at[:B, :S].set(x.astype(jnp.bfloat16))

    flops = 2 * Bp * (S_pad * H1 + H1 * H2 + H2 * A_pad)
    bytes_accessed = (xb.size * 2 + w1.size * 2 + w2.size * 2 + w3.size * 2
                      + b1.size * 4 + b2.size * 4 + b3.size * 4
                      + Bp * A_pad * 4)

    return pl.pallas_call(
        actor_kernel,
        out_shape=jax.ShapeDtypeStruct((Bp, A_pad), jnp.float32),
        grid_spec=pltpu.PrefetchScalarGridSpec(
            num_scalar_prefetch=0,
            grid=(num_tiles,),
            in_specs=[
                # activation stream: one batch tile per grid step
                pl.BlockSpec((tb, S_pad), lambda i: (i, 0)),
                # weights/biases: constant block index -> stay resident in VMEM
                pl.BlockSpec((S_pad, H1), lambda i: (0, 0)),
                pl.BlockSpec((1, H1), lambda i: (0, 0)),
                pl.BlockSpec((H1, H2), lambda i: (0, 0)),
                pl.BlockSpec((1, H2), lambda i: (0, 0)),
                pl.BlockSpec((H2, A_pad), lambda i: (0, 0)),
                pl.BlockSpec((1, A_pad), lambda i: (0, 0)),
            ],
            out_specs=pl.BlockSpec((tb, A_pad), lambda i: (i, 0)),
        ),
        compiler_params=pltpu.CompilerParams(
            dimension_semantics=("parallel",)),
        cost_estimate=pl.CostEstimate(
            flops=flops,
            transcendentals=Bp * A_pad,
            bytes_accessed=bytes_accessed),
    )(xb, w1, b1, w2, b2, w3, b3)


@functools.partial(jax.jit, static_argnames=("action_size",))
def actor_forward(x, prep, *, action_size):
    """Forward pass returning [B, action_size]; the un-pad slice is fused into
    the same jit as the pallas_call (no separate dispatch)."""
    out = actor_forward_padded(x, prep)
    return out[: x.shape[0], :action_size]


def init_actor_params(key, state_size, action_size, units_fc1=512, units_fc2=256):
    """Mirrors the PyTorch module's reset_parameters():
    fc1/fc2 weights ~ U(-1/sqrt(out_features), +1/sqrt(out_features))
    fc3 weights     ~ U(-0.00275, +0.00275)
    biases keep PyTorch's default Linear init ~ U(-1/sqrt(in_features), +1/sqrt(in_features)).
    Weights are stored transposed: [in, out]."""
    ks = jax.random.split(key, 6)

    def uniform(k, shape, limit):
        return jax.random.uniform(k, shape, jnp.float32, -limit, limit)

    lim1 = 1.0 / jnp.sqrt(jnp.float32(units_fc1))
    lim2 = 1.0 / jnp.sqrt(jnp.float32(units_fc2))

    w1 = uniform(ks[0], (state_size, units_fc1), lim1)
    b1 = uniform(ks[1], (1, units_fc1), 1.0 / jnp.sqrt(jnp.float32(state_size)))
    w2 = uniform(ks[2], (units_fc1, units_fc2), lim2)
    b2 = uniform(ks[3], (1, units_fc2), 1.0 / jnp.sqrt(jnp.float32(units_fc1)))
    w3 = uniform(ks[4], (units_fc2, action_size), 0.00275)
    b3 = uniform(ks[5], (1, action_size), 1.0 / jnp.sqrt(jnp.float32(units_fc2)))

    return {"fc1": (w1, b1), "fc2": (w2, b2), "fc3": (w3, b3)}


def actor_reference(x, params):
    """Plain-JAX reference with the same bf16-matmul / f32-accumulate recipe."""
    w1, b1 = params["fc1"]
    w2, b2 = params["fc2"]
    w3, b3 = params["fc3"]
    bf = jnp.bfloat16
    h = jnp.dot(x.astype(bf), w1.astype(bf), preferred_element_type=jnp.float32)
    h = jnp.maximum(h + b1, 0.0)
    h = jnp.dot(h.astype(bf), w2.astype(bf), preferred_element_type=jnp.float32)
    h = jnp.maximum(h + b2, 0.0)
    h = jnp.dot(h.astype(bf), w3.astype(bf), preferred_element_type=jnp.float32)
    return jnp.tanh(h + b3)


if __name__ == "__main__":
    # Tennis (multi-agent collab/compete) dims; batch exercises padding and the
    # per-TensorCore batch split on v7x while staying tiny in memory.
    STATE_SIZE = 24
    ACTION_SIZE = 2
    BATCH = 128

    key = jax.random.PRNGKey(0)
    k_params, k_x = jax.random.split(key)

    params = init_actor_params(k_params, STATE_SIZE, ACTION_SIZE)
    prep = prepare_actor_params(params)          # one-time, hoisted out of the hot path
    x = jax.random.normal(k_x, (BATCH, STATE_SIZE), dtype=jnp.float32)

    out = actor_forward(x, prep, action_size=ACTION_SIZE)
    out = jax.block_until_ready(out)

    ref = actor_reference(x, params)
    assert out.shape == (BATCH, ACTION_SIZE)
    assert jnp.allclose(out, ref, atol=1e-4, rtol=1e-3), "Pallas output mismatch vs reference"

    print("KERNEL_OK")
</pallas_src>

<mosaic_0001>
module attributes {stable_mosaic.version = 11 : i64} {
  func.func @actor_kernel(%arg0: i32, %arg1: memref<128x128xbf16, #tpu.memory_space<vmem>>, %arg2: memref<128x512xbf16, #tpu.memory_space<vmem>>, %arg3: memref<1x512xf32, #tpu.memory_space<vmem>>, %arg4: memref<512x256xbf16, #tpu.memory_space<vmem>>, %arg5: memref<1x256xf32, #tpu.memory_space<vmem>>, %arg6: memref<256x128xbf16, #tpu.memory_space<vmem>>, %arg7: memref<1x128xf32, #tpu.memory_space<vmem>>, %arg8: memref<128x128xf32, #tpu.memory_space<vmem>>) attributes {dimension_semantics = [#tpu.dimension_semantics<parallel>], iteration_bounds = array<i64: 1>, scalar_prefetch = 0 : i64, scratch_operands = 0 : i64, tpu.core_type = #tpu.core_type<tc>, window_params = [{transform_indices = @transform_0, window_bounds = array<i64: 128, 128>}, {pipeline_mode = #tpu.pipeline_mode<synchronous>, transform_indices = @transform_1, window_bounds = array<i64: 128, 512>}, {pipeline_mode = #tpu.pipeline_mode<synchronous>, transform_indices = @transform_2, window_bounds = array<i64: 1, 512>}, {pipeline_mode = #tpu.pipeline_mode<synchronous>, transform_indices = @transform_3, window_bounds = array<i64: 512, 256>}, {pipeline_mode = #tpu.pipeline_mode<synchronous>, transform_indices = @transform_4, window_bounds = array<i64: 1, 256>}, {pipeline_mode = #tpu.pipeline_mode<synchronous>, transform_indices = @transform_5, window_bounds = array<i64: 256, 128>}, {pipeline_mode = #tpu.pipeline_mode<synchronous>, transform_indices = @transform_6, window_bounds = array<i64: 1, 128>}, {transform_indices = @transform_7, window_bounds = array<i64: 128, 128>}]} {
    %c0 = arith.constant 0 : index
    %c0_0 = arith.constant 0 : index
    %0 = vector.load %arg1[%c0, %c0_0] : memref<128x128xbf16, #tpu.memory_space<vmem>>, vector<128x128xbf16>
    %c0_1 = arith.constant 0 : index
    %c0_2 = arith.constant 0 : index
    %1 = vector.load %arg2[%c0_1, %c0_2] : memref<128x512xbf16, #tpu.memory_space<vmem>>, vector<128x512xbf16>
    %cst = arith.constant dense<0.000000e+00> : vector<128x512xf32>
    %2 = tpu.matmul %0, %1, %cst {dimension_numbers = #tpu.dot_dimension_numbers<[1], [0], [0], [1], [0, 0, 1, 1], [], []>} : vector<128x128xbf16>, vector<128x512xbf16>, vector<128x512xf32> -> vector<128x512xf32>
    %c0_3 = arith.constant 0 : index
    %c0_4 = arith.constant 0 : index
    %3 = vector.load %arg3[%c0_3, %c0_4] : memref<1x512xf32, #tpu.memory_space<vmem>>, vector<1x512xf32>
    %4 = vector.broadcast %3 : vector<1x512xf32> to vector<128x512xf32>
    %5 = arith.addf %2, %4 : vector<128x512xf32>
    %cst_5 = arith.constant 0.000000e+00 : f32
    %6 = vector.broadcast %cst_5 : f32 to vector<128x512xf32>
    %7 = arith.maximumf %5, %6 : vector<128x512xf32>
    %8 = arith.truncf %7 : vector<128x512xf32> to vector<128x512xbf16>
    %c0_6 = arith.constant 0 : index
    %c0_7 = arith.constant 0 : index
    %9 = vector.load %arg4[%c0_6, %c0_7] : memref<512x256xbf16, #tpu.memory_space<vmem>>, vector<512x256xbf16>
    %cst_8 = arith.constant dense<0.000000e+00> : vector<128x256xf32>
    %10 = tpu.matmul %8, %9, %cst_8 {dimension_numbers = #tpu.dot_dimension_numbers<[1], [0], [0], [1], [0, 0, 1, 1], [], []>} : vector<128x512xbf16>, vector<512x256xbf16>, vector<128x256xf32> -> vector<128x256xf32>
    %c0_9 = arith.constant 0 : index
    %c0_10 = arith.constant 0 : index
    %11 = vector.load %arg5[%c0_9, %c0_10] : memref<1x256xf32, #tpu.memory_space<vmem>>, vector<1x256xf32>
    %12 = vector.broadcast %11 : vector<1x256xf32> to vector<128x256xf32>
    %13 = arith.addf %10, %12 : vector<128x256xf32>
    %cst_11 = arith.constant 0.000000e+00 : f32
    %14 = vector.broadcast %cst_11 : f32 to vector<128x256xf32>
    %15 = arith.maximumf %13, %14 : vector<128x256xf32>
    %16 = arith.truncf %15 : vector<128x256xf32> to vector<128x256xbf16>
    %c0_12 = arith.constant 0 : index
    %c0_13 = arith.constant 0 : index
    %17 = vector.load %arg6[%c0_12, %c0_13] : memref<256x128xbf16, #tpu.memory_space<vmem>>, vector<256x128xbf16>
    %cst_14 = arith.constant dense<0.000000e+00> : vector<128x128xf32>
    %18 = tpu.matmul %16, %17, %cst_14 {dimension_numbers = #tpu.dot_dimension_numbers<[1], [0], [0], [1], [0, 0, 1, 1], [], []>} : vector<128x256xbf16>, vector<256x128xbf16>, vector<128x128xf32> -> vector<128x128xf32>
    %c0_15 = arith.constant 0 : index
    %c0_16 = arith.constant 0 : index
    %19 = vector.load %arg7[%c0_15, %c0_16] : memref<1x128xf32, #tpu.memory_space<vmem>>, vector<1x128xf32>
    %20 = vector.broadcast %19 : vector<1x128xf32> to vector<128x128xf32>
    %21 = arith.addf %18, %20 : vector<128x128xf32>
    %22 = math.tanh %21 : vector<128x128xf32>
    %c0_17 = arith.constant 0 : index
    %c0_18 = arith.constant 0 : index
    %23 = vector.load %arg8[%c0_17, %c0_18] : memref<128x128xf32, #tpu.memory_space<vmem>>, vector<128x128xf32>
    tpu.vector_store %arg8[%c0_17, %c0_18], %22 {strides = array<i32>} : memref<128x128xf32, #tpu.memory_space<vmem>>, vector<128x128xf32>,
    return
  }
  func.func @transform_0(%arg0: i32) -> (i32, i32) {
    %c0_i32 = arith.constant 0 : i32
    %c0_i32_0 = arith.constant 0 : i32
    return %arg0, %c0_i32 : i32, i32
  }
  func.func @transform_1(%arg0: i32) -> (i32, i32) {
    %c0_i32 = arith.constant 0 : i32
    %c0_i32_0 = arith.constant 0 : i32
    %c0_i32_1 = arith.constant 0 : i32
    return %c0_i32, %c0_i32_0 : i32, i32
  }
  func.func @transform_2(%arg0: i32) -> (i32, i32) {
    %c0_i32 = arith.constant 0 : i32
    %c0_i32_0 = arith.constant 0 : i32
    %c0_i32_1 = arith.constant 0 : i32
    return %c0_i32, %c0_i32_0 : i32, i32
  }
  func.func @transform_3(%arg0: i32) -> (i32, i32) {
    %c0_i32 = arith.constant 0 : i32
    %c0_i32_0 = arith.constant 0 : i32
    %c0_i32_1 = arith.constant 0 : i32
    return %c0_i32, %c0_i32_0 : i32, i32
  }
  func.func @transform_4(%arg0: i32) -> (i32, i32) {
    %c0_i32 = arith.constant 0 : i32
    %c0_i32_0 = arith.constant 0 : i32
    %c0_i32_1 = arith.constant 0 : i32
    return %c0_i32, %c0_i32_0 : i32, i32
  }
  func.func @transform_5(%arg0: i32) -> (i32, i32) {
    %c0_i32 = arith.constant 0 : i32
    %c0_i32_0 = arith.constant 0 : i32
    %c0_i32_1 = arith.constant 0 : i32
    return %c0_i32, %c0_i32_0 : i32, i32
  }
  func.func @transform_6(%arg0: i32) -> (i32, i32) {
    %c0_i32 = arith.constant 0 : i32
    %c0_i32_0 = arith.constant 0 : i32
    %c0_i32_1 = arith.constant 0 : i32
    return %c0_i32, %c0_i32_0 : i32, i32
  }
  func.func @transform_7(%arg0: i32) -> (i32, i32) {
    %c0_i32 = arith.constant 0 : i32
    %c0_i32_0 = arith.constant 0 : i32
    return %arg0, %c0_i32 : i32, i32
  }
}

</mosaic_0001>

<bundles_post_ra>
// kernel: actor_forward.1
= control target key start
LH: loop header
LB: loop body
LE: loop exit
PB: predicated region body
PF: predicated region fallthrough
CT: control target
= control target key end

     0   :  { %12 = vsyncpa [#allocation3], 0  ;;  %s2433_s0 = inlined_call_operand.vmem [shape: bf16[128,128], index: 0, kind: input, shape index: {}]   ;;  %s2434_s1 = inlined_call_operand.vmem [shape: bf16[128,512], index: 1, kind: input, shape index: {}]   ;;  %s2435_s2 = inlined_call_operand.vmem [shape: f32[1,512], index: 2, kind: input, shape index: {}]   ;;  %s2436_s3 = inlined_call_operand.hbm [shape: bf16[512,256], index: 3, kind: input, shape index: {}]   ;;  %s2437_s4 = inlined_call_operand.vmem [shape: f32[1,256], index: 4, kind: input, shape index: {}]   ;;  %s2438_s5 = inlined_call_operand.hbm [shape: bf16[256,128], index: 5, kind: input, shape index: {}]   ;;  %s2439_s6 = inlined_call_operand.vmem [shape: f32[1,128], index: 6, kind: input, shape index: {}]   ;;  %s2440_s7 = inlined_call_operand.vmem [shape: f32[128,128], index: 7, kind: output, shape index: {}]  }
   0x1   :  { %13 = vsyncpa [#allocation5], 0  ;;  %s2047_s24 = smov [#allocation2]  }
   0x2   :  { %s25_s25 = sshll.u32 %s2047_s24, 4  ;;  %s26_s25 = int_to_ptr.vmem [resolvable:$true] %s25_s25 }
   0x3   :  { %s2011_s26 = scalar_lea.vmem %s26_s25, 8192  ;;  %p2016_p1 = scmp.lt.s32.totalorder %s26_s25, %s26_s25 }
   0x4   :  { %p2012_p0 = scmp.ne.s32.totalorder %s26_s25, %s2011_s26  ;;  %p2017_p2 = scmp.lt.s32.totalorder %s2011_s26, %s2011_s26 }
   0x6   :  { %p2018_p3 = por %p2017_p2, %p2016_p1 }
   0x8   :  { %p2019_p4 = pnand %p2018_p3, %p2012_p0 }
   0xa   :  { %2022 = shalt.err (!%p2019_p4)
}
   0xb   :  { %s2048_s27 = smov 128   ;;  %s2049_s28 = smov 8  }
   0xc   :  { %31 = dma.hbm_to_vmem [thread:$0]  %s2436_s3, 8192, %s26_s25, [#allocation3], %s2048_s27, %s2048_s27, %s2049_s28  }
   0xd   :  { %s2050_s8 = smov [#allocation4]  }
   0xe   :  { %s39_s9 = sshll.u32 %s2050_s8, 4  ;;  %s40_s9 = int_to_ptr.vmem [resolvable:$true] %s39_s9 }
   0xf   :  { %s2031_s10 = scalar_lea.vmem %s40_s9, 2048  ;;  %p2036_p6 = scmp.lt.s32.totalorder %s40_s9, %s40_s9 }
  0x10   :  { %p2032_p5 = scmp.ne.s32.totalorder %s40_s9, %s2031_s10  ;;  %p2037_p7 = scmp.lt.s32.totalorder %s2031_s10, %s2031_s10 }
  0x12   :  { %p2038_p8 = por %p2037_p7, %p2036_p6 }
  0x14   :  { %p2039_p9 = pnand %p2038_p8, %p2032_p5 }
  0x16   :  { %2042 = shalt.err (!%p2039_p9)
}
  0x17   :  { %s2051_s11 = smov 64   ;;  %s2052_s12 = smov 4  }
  0x18   :  { %45 = dma.hbm_to_vmem [thread:$0]  %s2438_s5, 2048, %s40_s9, [#allocation5], %s2051_s11, %s2051_s11, %s2052_s12  }
  0x19   :  { %2043 = dma.done.wait [#allocation3], 8192  }
  0x1a   :  { %2044 = vsyncadd [#allocation3], 4294959104 }
  0x1b   :  { %2045 = dma.done.wait [#allocation5], 2048  }
  0x1c   :  { %2046 = vsyncadd [#allocation5], 4294965248  ;;  %v2053_v0 = vmov 0   ;;  %v1803_v1 = vld [vmem:[%s2434_s1 + $0xe4] ss:$16 sps:$4 sm:$0xff]   ;;  %v1852_v44 = vld [vmem:[%s2433_s0 + $0x8] sm:$0xff]  }
  0x1d   :  { %365 = vmatprep.mubr.bf16.mxu0 %v2053_v0  ;;  %478 = vmatprep.mubr.bf16.mxu1 %v2053_v0  ;;  %v1805_v2 = vld [vmem:[%s2434_s1 + $0xec] ss:$16 sps:$4 sm:$0xff]   ;;  %v1807_v3 = vld [vmem:[%s2434_s1 + $0xe0] ss:$16 sps:$4 sm:$0xff]   ;;  %v1808_v4 = vld [vmem:[%s2434_s1 + $0xe8] ss:$16 sps:$4 sm:$0xff]  }
  0x1e   :  { %333 = vmatprep.subr.bf16.mxu0 %v1803_v1  ;;  %446 = vmatprep.subr.bf16.mxu1 %v1805_v2  ;;  %v1809_v5 = vld [vmem:[%s2434_s1 + $0xc4] ss:$16 sps:$4 sm:$0xff]   ;;  %v1811_v6 = vld [vmem:[%s2434_s1 + $0xcc] ss:$16 sps:$4 sm:$0xff]   ;;  %v1813_v7 = vld [vmem:[%s2434_s1 + $0xc0] ss:$16 sps:$4 sm:$0xff]  }
  0x1f   :  { %334 = vmatpush1.bf16.msra.mxu0 %v1807_v3  ;;  %447 = vmatpush1.bf16.msra.mxu1 %v1808_v4  ;;  %v1814_v8 = vld [vmem:[%s2434_s1 + $0xc8] ss:$16 sps:$4 sm:$0xff]   ;;  %v1815_v9 = vld [vmem:[%s2434_s1 + $0xa4] ss:$16 sps:$4 sm:$0xff]   ;;  %v1817_v10 = vld [vmem:[%s2434_s1 + $0xac] ss:$16 sps:$4 sm:$0xff]  }
  0x20   :  { %335 = vmatprep.subr.bf16.mxu0 %v1809_v5  ;;  %448 = vmatprep.subr.bf16.mxu1 %v1811_v6  ;;  %v1819_v11 = vld [vmem:[%s2434_s1 + $0xa0] ss:$16 sps:$4 sm:$0xff]   ;;  %v1820_v12 = vld [vmem:[%s2434_s1 + $0xa8] ss:$16 sps:$4 sm:$0xff]   ;;  %v1821_v13 = vld [vmem:[%s2434_s1 + $0x84] ss:$16 sps:$4 sm:$0xff]  }
  0x21   :  { %v1823_v14 = vld [vmem:[%s2434_s1 + $0x8c] ss:$16 sps:$4 sm:$0xff]   ;;  %v1825_v15 = vld [vmem:[%s2434_s1 + $0x80] ss:$16 sps:$4 sm:$0xff]   ;;  %v1826_v16 = vld [vmem:[%s2434_s1 + $0x88] ss:$16 sps:$4 sm:$0xff]  }
  0x22   :  { %v1827_v17 = vld [vmem:[%s2434_s1 + $0x64] ss:$16 sps:$4 sm:$0xff]   ;;  %v1829_v18 = vld [vmem:[%s2434_s1 + $0x6c] ss:$16 sps:$4 sm:$0xff]   ;;  %v1831_v19 = vld [vmem:[%s2434_s1 + $0x60] ss:$16 sps:$4 sm:$0xff]  }
  0x23   :  { %336 = vmatpush1.bf16.msra.mxu0 %v1813_v7  ;;  %449 = vmatpush1.bf16.msra.mxu1 %v1814_v8  ;;  %v1832_v20 = vld [vmem:[%s2434_s1 + $0x68] ss:$16 sps:$4 sm:$0xff]   ;;  %v1833_v21 = vld [vmem:[%s2434_s1 + $0x44] ss:$16 sps:$4 sm:$0xff]   ;;  %v1835_v22 = vld [vmem:[%s2434_s1 + $0x4c] ss:$16 sps:$4 sm:$0xff]  }
  0x24   :  { %337 = vmatprep.subr.bf16.mxu0 %v1815_v9  ;;  %450 = vmatprep.subr.bf16.mxu1 %v1817_v10  ;;  %v1837_v23 = vld [vmem:[%s2434_s1 + $0x40] ss:$16 sps:$4 sm:$0xff]   ;;  %v1838_v24 = vld [vmem:[%s2434_s1 + $0x48] ss:$16 sps:$4 sm:$0xff]   ;;  %v1839_v25 = vld [vmem:[%s2434_s1 + $0x24] ss:$16 sps:$4 sm:$0xff]  }
  0x25   :  { %v1841_v26 = vld [vmem:[%s2434_s1 + $0x2c] ss:$16 sps:$4 sm:$0xff]   ;;  %v1843_v27 = vld [vmem:[%s2434_s1 + $0x20] ss:$16 sps:$4 sm:$0xff]   ;;  %v1844_v28 = vld [vmem:[%s2434_s1 + $0x28] ss:$16 sps:$4 sm:$0xff]  }
  0x26   :  { %v1845_v29 = vld [vmem:[%s2434_s1 + $0x4] ss:$16 sps:$4 sm:$0xff]   ;;  %v1847_v30 = vld [vmem:[%s2434_s1 + $0xc] ss:$16 sps:$4 sm:$0xff]   ;;  %v1849_v31 = vld [vmem:[%s2434_s1] ss:$16 sps:$4 sm:$0xff]  }
  0x27   :  { %338 = vmatpush1.bf16.msra.mxu0 %v1819_v11  ;;  %451 = vmatpush1.bf16.msra.mxu1 %v1820_v12  ;;  %v1850_v32 = vld [vmem:[%s2434_s1 + $0x8] ss:$16 sps:$4 sm:$0xff]   ;;  %v1861_v33 = vld [vmem:[#allocation2 + $0x74] ss:$8 sps:$4 sm:$0xff]   ;;  %v1851_v34 = vld [vmem:[%s2433_s0] sm:$0xff]  }
  0x28   :  { %339 = vmatprep.subr.bf16.mxu0 %v1821_v13  ;;  %452 = vmatprep.subr.bf16.mxu1 %v1823_v14  ;;  %v1864_v35 = vld [vmem:[#allocation2 + $0x174] ss:$8 sps:$4 sm:$0xff]   ;;  %v1859_v36 = vld [vmem:[#allocation2 + $0x70] ss:$8 sps:$4 sm:$0xff]   ;;  %v1867_v38 = vld [vmem:[#allocation2 + $0x64] ss:$8 sps:$4 sm:$0xff]  }
  0x29   :  { %v1862_v37 = vld [vmem:[#allocation2 + $0x170] ss:$8 sps:$4 sm:$0xff]   ;;  %v1870_v39 = vld [vmem:[#allocation2 + $0x164] ss:$8 sps:$4 sm:$0xff]   ;;  %v1865_v40 = vld [vmem:[#allocation2 + $0x60] ss:$8 sps:$4 sm:$0xff]  }
  0x2a   :  { %v1868_v41 = vld [vmem:[#allocation2 + $0x160] ss:$8 sps:$4 sm:$0xff]   ;;  %v1873_v42 = vld [vmem:[#allocation2 + $0x54] ss:$8 sps:$4 sm:$0xff]   ;;  %v1871_v45 = vld [vmem:[#allocation2 + $0x50] ss:$8 sps:$4 sm:$0xff]  }
  0x2b   :  { %340 = vmatpush1.bf16.msra.mxu0 %v1825_v15  ;;  %453 = vmatpush1.bf16.msra.mxu1 %v1826_v16  ;;  %v1876_v43 = vld [vmem:[#allocation2 + $0x154] ss:$8 sps:$4 sm:$0xff]   ;;  %v1874_v46 = vld [vmem:[#allocation2 + $0x150] ss:$8 sps:$4 sm:$0xff]   ;;  %v1879_v47 = vld [vmem:[#allocation2 + $0x44] ss:$8 sps:$4 sm:$0xff]  }
  0x2c   :  { %341 = vmatprep.subr.bf16.mxu0 %v1827_v17  ;;  %454 = vmatprep.subr.bf16.mxu1 %v1829_v18  ;;  %v1882_v48 = vld [vmem:[#allocation2 + $0x144] ss:$8 sps:$4 sm:$0xff]   ;;  %v1877_v49 = vld [vmem:[#allocation2 + $0x40] ss:$8 sps:$4 sm:$0xff]   ;;  %v1885_v51 = vld [vmem:[#allocation2 + $0x34] ss:$8 sps:$4 sm:$0xff]  }
  0x2d   :  { %v1880_v50 = vld [vmem:[#allocation2 + $0x140] ss:$8 sps:$4 sm:$0xff]   ;;  %v1888_v52 = vld [vmem:[#allocation2 + $0x134] ss:$8 sps:$4 sm:$0xff]   ;;  %v1883_v54 = vld [vmem:[#allocation2 + $0x30] ss:$8 sps:$4 sm:$0xff]  }
  0x2e   :  { %v1853_v53 = vld [vmem:[%s2433_s0 + $0x10] sm:$0xff]   ;;  %v1891_v56 = vld [vmem:[#allocation2 + $0x24] ss:$8 sps:$4 sm:$0xff]   ;;  %v1889_v58 = vld [vmem:[#allocation2 + $0x20] ss:$8 sps:$4 sm:$0xff]  }
  0x2f   :  { %342 = vmatpush1.bf16.msra.mxu0 %v1831_v19  ;;  %455 = vmatpush1.bf16.msra.mxu1 %v1832_v20  ;;  %v1886_v55 = vld [vmem:[#allocation2 + $0x130] ss:$8 sps:$4 sm:$0xff]   ;;  %v1894_v57 = vld [vmem:[#allocation2 + $0x124] ss:$8 sps:$4 sm:$0xff]   ;;  %v1892_v59 = vld [vmem:[#allocation2 + $0x120] ss:$8 sps:$4 sm:$0xff]  }
  0x30   :  { %343 = vmatprep.subr.bf16.mxu0 %v1833_v21  ;;  %456 = vmatprep.subr.bf16.mxu1 %v1835_v22  ;;  %v1897_v60 = vld [vmem:[#allocation2 + $0x14] ss:$8 sps:$4 sm:$0xff]   ;;  %v1895_v63 = vld [vmem:[#allocation2 + $0x10] ss:$8 sps:$4 sm:$0xff]   ;;  %v1903_v2 = vld [vmem:[#allocation2 + $0x4] ss:$8 sps:$4 sm:$0xff]  }
  0x31   :  { %v1900_v61 = vld [vmem:[#allocation2 + $0x114] ss:$8 sps:$4 sm:$0xff]   ;;  %v1898_v1 = vld [vmem:[#allocation2 + $0x110] ss:$8 sps:$4 sm:$0xff]   ;;  %v1906_v3 = vld [vmem:[#allocation2 + $0x104] ss:$8 sps:$4 sm:$0xff]  }
  0x32   :  { %v1854_v62 = vld [vmem:[%s2433_s0 + $0x18] sm:$0xff]   ;;  %v1901_v4 = vld [vmem:[#allocation2] ss:$8 sps:$4 sm:$0xff]   ;;  %v1915_v11 = vld [vmem:[#allocation2 + $0xe4] ss:$8 sps:$4 sm:$0xff]  }
  0x33   :  { %344 = vmatpush1.bf16.msra.mxu0 %v1837_v23  ;;  %457 = vmatpush1.bf16.msra.mxu1 %v1838_v24  ;;  %v1855_v5 = vld [vmem:[%s2433_s0 + $0x20] sm:$0xff]   ;;  %v1909_v7 = vld [vmem:[#allocation2 + $0xf4] ss:$8 sps:$4 sm:$0xff]   ;;  %v1907_v9 = vld [vmem:[#allocation2 + $0xf0] ss:$8 sps:$4 sm:$0xff]  }
  0x34   :  { %345 = vmatprep.subr.bf16.mxu0 %v1839_v25  ;;  %458 = vmatprep.subr.bf16.mxu1 %v1841_v26  ;;  %v1904_v6 = vld [vmem:[#allocation2 + $0x100] ss:$8 sps:$4 sm:$0xff]   ;;  %v1912_v8 = vld [vmem:[#allocation2 + $0x1f4] ss:$8 sps:$4 sm:$0xff]   ;;  %v1910_v10 = vld [vmem:[#allocation2 + $0x1f0] ss:$8 sps:$4 sm:$0xff]  }
  0x35   :  { %v1918_v12 = vld [vmem:[#allocation2 + $0x1e4] ss:$8 sps:$4 sm:$0xff]   ;;  %v1913_v13 = vld [vmem:[#allocation2 + $0xe0] ss:$8 sps:$4 sm:$0xff]   ;;  %v1921_v15 = vld [vmem:[#allocation2 + $0xd4] ss:$8 sps:$4 sm:$0xff]  }
  0x36   :  { %v1916_v14 = vld [vmem:[#allocation2 + $0x1e0] ss:$8 sps:$4 sm:$0xff]   ;;  %v1924_v16 = vld [vmem:[#allocation2 + $0x1d4] ss:$8 sps:$4 sm:$0xff]   ;;  %v1919_v18 = vld [vmem:[#allocation2 + $0xd0] ss:$8 sps:$4 sm:$0xff]  }
  0x37   :  { %346 = vmatpush1.bf16.msra.mxu0 %v1843_v27  ;;  %459 = vmatpush1.bf16.msra.mxu1 %v1844_v28  ;;  %v1856_v17 = vld [vmem:[%s2433_s0 + $0x28] sm:$0xff]   ;;  %v1922_v19 = vld [vmem:[#allocation2 + $0x1d0] ss:$8 sps:$4 sm:$0xff]   ;;  %v1933_v24 = vld [vmem:[#allocation2 + $0xb4] ss:$8 sps:$4 sm:$0xff]  }
  0x38   :  { %347 = vmatprep.subr.bf16.mxu0 %v1845_v29  ;;  %460 = vmatprep.subr.bf16.mxu1 %v1847_v30  ;;  %v1927_v20 = vld [vmem:[#allocation2 + $0xc4] ss:$8 sps:$4 sm:$0xff]   ;;  %v1925_v22 = vld [vmem:[#allocation2 + $0xc0] ss:$8 sps:$4 sm:$0xff]   ;;  %v1936_v25 = vld [vmem:[#allocation2 + $0x1b4] ss:$8 sps:$4 sm:$0xff]  }
  0x39   :  { %v1930_v21 = vld [vmem:[#allocation2 + $0x1c4] ss:$8 sps:$4 sm:$0xff]   ;;  %v1928_v23 = vld [vmem:[#allocation2 + $0x1c0] ss:$8 sps:$4 sm:$0xff]   ;;  %v1857_v26 = vld [vmem:[%s2433_s0 + $0x30] sm:$0xff]  }
  0x3a   :  { %v1931_v27 = vld [vmem:[#allocation2 + $0xb0] ss:$8 sps:$4 sm:$0xff]   ;;  %v1939_v30 = vld [vmem:[#allocation2 + $0xa4] ss:$8 sps:$4 sm:$0xff]  }
  0x3b   :  { %348 = vmatpush1.bf16.msra.mxu0 %v1849_v31  ;;  %461 = vmatpush1.bf16.msra.mxu1 %v1850_v32  ;;  %v1934_v28 = vld [vmem:[#allocation2 + $0x1b0] ss:$8 sps:$4 sm:$0xff]   ;;  %v1942_v31 = vld [vmem:[#allocation2 + $0x1a4] ss:$8 sps:$4 sm:$0xff]   ;;  %v1937_v32 = vld [vmem:[#allocation2 + $0xa0] ss:$8 sps:$4 sm:$0xff]  }
  0x3c   :  { %1051 = vmatprep.subr.bf16.mxu0 %v1861_v33  ;;  %1164 = vmatprep.subr.bf16.mxu1 %v1864_v35  ;;  %v1858_v29 = vld [vmem:[%s2433_s0 + $0x38] sm:$0xff]   ;;  %v1940_v33 = vld [vmem:[#allocation2 + $0x1a0] ss:$8 sps:$4 sm:$0xff]  }
  0x3d   :  { %v1948_v35 = vld [vmem:[#allocation2 + $0x194] ss:$8 sps:$4 sm:$0xff]  }
  0x3e   :  { %366 = vmatmul.mubr.bf16.vlgmr.msra.gmra.mxu0 %v1851_v34  ;;  %479 = vmatmul.mubr.bf16.vlgmr.msra.gmra.mxu1 %v1851_v34  ;;  %v1945_v34 = vld [vmem:[#allocation2 + $0x94] ss:$8 sps:$4 sm:$0xff]  }
  0x3f   :  { %375 = vmatprep.mubr.bf16.mxu0 %v2053_v0  ;;  %488 = vmatprep.mubr.bf16.mxu1 %v2053_v0 }
  0x40   :  { %1052 = vmatpush1.bf16.msra.mxu0 %v1859_v36  ;;  %1165 = vmatpush1.bf16.msra.mxu1 %v1862_v37  ;;  %v1943_v36 = vld [vmem:[#allocation2 + $0x90] ss:$8 sps:$4 sm:$0xff]   ;;  %v1951_v37 = vld [vmem:[#allocation2 + $0x84] ss:$8 sps:$4 sm:$0xff]  }
  0x41   :  { %1053 = vmatprep.subr.bf16.mxu0 %v1867_v38  ;;  %1166 = vmatprep.subr.bf16.mxu1 %v1870_v39  ;;  %v1954_v38 = vld [vmem:[#allocation2 + $0x184] ss:$8 sps:$4 sm:$0xff]   ;;  %v1949_v39 = vld [vmem:[#allocation2 + $0x80] ss:$8 sps:$4 sm:$0xff]  }
  0x44   :  { %1054 = vmatpush1.bf16.msra.mxu0 %v1865_v40  ;;  %1167 = vmatpush1.bf16.msra.mxu1 %v1868_v41  ;;  %v1952_v40 = vld [vmem:[#allocation2 + $0x180] ss:$8 sps:$4 sm:$0xff]   ;;  %v1955_v41 = vld [vmem:[#allocation4 + $0x78] sm:$0xff]  }
  0x45   :  { %1055 = vmatprep.subr.bf16.mxu0 %v1873_v42  ;;  %1168 = vmatprep.subr.bf16.mxu1 %v1876_v43  ;;  %v105_v42 = vlaneseq }
  0x46   :  { %376 = vmatmul.mubr.bf16.gmra.mxu0 %v1852_v44  ;;  %489 = vmatmul.mubr.bf16.gmra.mxu1 %v1852_v44 }
  0x47   :  { %385 = vmatprep.mubr.bf16.mxu0 %v2053_v0  ;;  %498 = vmatprep.mubr.bf16.mxu1 %v2053_v0  ;;  %v2236_v43 = vshrl.u32 %v105_v42, 7 }
  0x48   :  { %1056 = vmatpush1.bf16.msra.mxu0 %v1871_v45  ;;  %1169 = vmatpush1.bf16.msra.mxu1 %v1874_v46 }
  0x49   :  { %1057 = vmatprep.subr.bf16.mxu0 %v1879_v47  ;;  %1170 = vmatprep.subr.bf16.mxu1 %v1882_v48  ;;  %v111_v44 = vsub.s32 1, %v2236_v43  ;;  %v119_v45 = vsub.s32 3, %v2236_v43  ;;  %v107_v46 = vsub.s32 0, %v2236_v43  ;;  %v115_v47 = vsub.s32 2, %v2236_v43  ;;  %v103_v48 = vld [vmem:[%s2435_s2] sm:$0xf] }
  0x4c   :  { %1058 = vmatpush1.bf16.msra.mxu0 %v1877_v49  ;;  %1171 = vmatpush1.bf16.msra.mxu1 %v1880_v50 }
  0x4d   :  { %1059 = vmatprep.subr.bf16.mxu0 %v1885_v51  ;;  %1172 = vmatprep.subr.bf16.mxu1 %v1888_v52  ;;  %v2247_v51 = vrot.slane %v103_v48, %v111_v44  ;;  %v2249_v52 = vrot.slane %v103_v48, %v119_v45 }
  0x4e   :  { %386 = vmatmul.mubr.bf16.gmra.mxu0 %v1853_v53  ;;  %499 = vmatmul.mubr.bf16.gmra.mxu1 %v1853_v53  ;;  %v2253_v53 = vrot.slane %v103_v48, %v107_v46 }
  0x4f   :  { %395 = vmatprep.mubr.bf16.mxu0 %v2053_v0  ;;  %508 = vmatprep.mubr.bf16.mxu1 %v2053_v0 }
  0x50   :  { %1060 = vmatpush1.bf16.msra.mxu0 %v1883_v54  ;;  %1173 = vmatpush1.bf16.msra.mxu1 %v1886_v55  ;;  %v2255_v54 = vrot.slane %v103_v48, %v115_v47 }
  0x51   :  { %1061 = vmatprep.subr.bf16.mxu0 %v1891_v56  ;;  %1174 = vmatprep.subr.bf16.mxu1 %v1894_v57 }
  0x54   :  { %1062 = vmatpush1.bf16.msra.mxu0 %v1889_v58  ;;  %1175 = vmatpush1.bf16.msra.mxu1 %v1892_v59 }
  0x55   :  { %1063 = vmatprep.subr.bf16.mxu0 %v1897_v60  ;;  %1176 = vmatprep.subr.bf16.mxu1 %v1900_v61 }
  0x56   :  { %396 = vmatmul.mubr.bf16.gmra.mxu0 %v1854_v62  ;;  %509 = vmatmul.mubr.bf16.gmra.mxu1 %v1854_v62 }
  0x57   :  { %405 = vmatprep.mubr.bf16.mxu0 %v2053_v0  ;;  %518 = vmatprep.mubr.bf16.mxu1 %v2053_v0 }
  0x58   :  { %1064 = vmatpush1.bf16.msra.mxu0 %v1895_v63  ;;  %1177 = vmatpush1.bf16.msra.mxu1 %v1898_v1 }
  0x59   :  { %1065 = vmatprep.subr.bf16.mxu0 %v1903_v2  ;;  %1178 = vmatprep.subr.bf16.mxu1 %v1906_v3 }
  0x5c   :  { %1066 = vmatpush1.bf16.msra.mxu0 %v1901_v4  ;;  %1179 = vmatpush1.bf16.msra.mxu1 %v1904_v6 }
  0x5d   :  { %1067 = vmatprep.subr.bf16.mxu0 %v1909_v7  ;;  %1180 = vmatprep.subr.bf16.mxu1 %v1912_v8 }
  0x5e   :  { %406 = vmatmul.mubr.bf16.gmra.mxu0 %v1855_v5  ;;  %519 = vmatmul.mubr.bf16.gmra.mxu1 %v1855_v5 }
  0x5f   :  { %415 = vmatprep.mubr.bf16.mxu0 %v2053_v0  ;;  %528 = vmatprep.mubr.bf16.mxu1 %v2053_v0 }
  0x60   :  { %1068 = vmatpush2.bf16.msra.mxu0 %v1907_v9  ;;  %1181 = vmatpush2.bf16.msra.mxu1 %v1910_v10 }
  0x61   :  { %1069 = vmatprep.subr.bf16.mxu0 %v1915_v11  ;;  %1182 = vmatprep.subr.bf16.mxu1 %v1918_v12 }
  0x64   :  { %1070 = vmatpush2.bf16.msra.mxu0 %v1913_v13  ;;  %1183 = vmatpush2.bf16.msra.mxu1 %v1916_v14 }
  0x65   :  { %1071 = vmatprep.subr.bf16.mxu0 %v1921_v15  ;;  %1184 = vmatprep.subr.bf16.mxu1 %v1924_v16 }
  0x66   :  { %416 = vmatmul.mubr.bf16.gmra.mxu0 %v1856_v17  ;;  %529 = vmatmul.mubr.bf16.gmra.mxu1 %v1856_v17 }
  0x67   :  { %425 = vmatprep.mubr.bf16.mxu0 %v2053_v0  ;;  %538 = vmatprep.mubr.bf16.mxu1 %v2053_v0 }
  0x68   :  { %1072 = vmatpush2.bf16.msra.mxu0 %v1919_v18  ;;  %1185 = vmatpush2.bf16.msra.mxu1 %v1922_v19 }
  0x69   :  { %1073 = vmatprep.subr.bf16.mxu0 %v1927_v20  ;;  %1186 = vmatprep.subr.bf16.mxu1 %v1930_v21  ;;  %v1956_v20 = vld [vmem:[#allocation4 + $0x38] sm:$0xff]  }
  0x6c   :  { %1074 = vmatpush2.bf16.msra.mxu0 %v1925_v22  ;;  %1187 = vmatpush2.bf16.msra.mxu1 %v1928_v23 }
  0x6d   :  { %1075 = vmatprep.subr.bf16.mxu0 %v1933_v24  ;;  %1188 = vmatprep.subr.bf16.mxu1 %v1936_v25 }
  0x6e   :  { %426 = vmatmul.mubr.bf16.gmra.mxu0 %v1857_v26  ;;  %539 = vmatmul.mubr.bf16.gmra.mxu1 %v1857_v26  ;;  %v1957_v26 = vld [vmem:[#allocation4 + $0x70] sm:$0xff]  }
  0x6f   :  { %435 = vmatprep.mubr.bf16.mxu0 %v2053_v0  ;;  %548 = vmatprep.mubr.bf16.mxu1 %v2053_v0  ;;  %v1946_v0 = vld [vmem:[#allocation2 + $0x190] ss:$8 sps:$4 sm:$0xff]  }
  0x70   :  { %1076 = vmatpush2.bf16.msra.mxu0 %v1931_v27  ;;  %1189 = vmatpush2.bf16.msra.mxu1 %v1934_v28 }
  0x71   :  { %1077 = vmatprep.subr.bf16.mxu0 %v1939_v30  ;;  %1190 = vmatprep.subr.bf16.mxu1 %v1942_v31 }
  0x74   :  { %1078 = vmatpush2.bf16.msra.mxu0 %v1937_v32  ;;  %1191 = vmatpush2.bf16.msra.mxu1 %v1940_v33 }
  0x75   :  { %1079 = vmatprep.subr.bf16.mxu0 %v1945_v34  ;;  %1192 = vmatprep.subr.bf16.mxu1 %v1948_v35 }
  0x76   :  { %436 = vmatmul.mubr.bf16.gmra.mxu0 %v1858_v29  ;;  %549 = vmatmul.mubr.bf16.gmra.mxu1 %v1858_v29 }
  0x78   :  { %1080 = vmatpush2.bf16.msra.mxu0 %v1943_v36  ;;  %1193 = vmatpush2.bf16.msra.mxu1 %v1946_v0  ;;  %v1958_v36 = vld [vmem:[#allocation4 + $0x30] sm:$0xff]  }
  0x79   :  { %1081 = vmatprep.subr.bf16.mxu0 %v1951_v37  ;;  %1194 = vmatprep.subr.bf16.mxu1 %v1954_v38 }
  0x7c   :  { %1082 = vmatpush2.bf16.msra.mxu0 %v1949_v39  ;;  %1195 = vmatpush2.bf16.msra.mxu1 %v1952_v40  ;;  %v1959_v40 = vld [vmem:[#allocation4 + $0x68] sm:$0xff]  }
  0x7d   :  { %1716 = vmatprep.subr.bf16.mxu0 %v1955_v41  ;;  %1780 = vmatprep.subr.bf16.mxu1 %v1955_v41 }
  0xfe   :  { %v367_v49 = vpop.f32.mrf.mxu0  ;;  %v480_v50 = vpop.f32.mrf.mxu1 }
  0xff   :  { %v368_v63 = vadd.f32 %v367_v49, %v2253_v53  ;;  %v481_v1 = vadd.f32 %v480_v50, %v2255_v54 }
 0x100   :  { %v369_v55 = vpop.f32.mrf.mxu0  ;;  %v482_v56 = vpop.f32.mrf.mxu1 }
 0x101   :  { %v370_v59 = vadd.f32 %v369_v55, %v2247_v51  ;;  %v483_v60 = vadd.f32 %v482_v56, %v2249_v52  ;;  %v559_v14 = vmax.f32 %v368_v63, 0.0  ;;  %v561_v15 = vmax.f32 %v481_v1, 0.0  ;;  %v1961_v1 = vld [vmem:[#allocation4 + $0x60] sm:$0xff]  }
 0x102   :  { %v371_v57 = vpop.f32.mrf.mxu0  ;;  %v484_v58 = vpop.f32.mrf.mxu1 }
 0x103   :  { %v372_v61 = vadd.f32 %v371_v57, %v2253_v53  ;;  %v485_v62 = vadd.f32 %v484_v58, %v2255_v54  ;;  %v560_v10 = vmax.f32 %v370_v59, 0.0  ;;  %v562_v11 = vmax.f32 %v483_v60, 0.0  ;;  %v1960_v58 = vld [vmem:[#allocation4 + $0x28] sm:$0xff]  }
 0x104   :  { %v373_v2 = vpop.f32.mrf.mxu0  ;;  %v486_v3 = vpop.f32.mrf.mxu1 }
 0x105   :  { %v374_v4 = vadd.f32 %v373_v2, %v2247_v51  ;;  %v487_v5 = vadd.f32 %v486_v3, %v2249_v52  ;;  %v563_v6 = vmax.f32 %v372_v61, 0.0  ;;  %v565_v7 = vmax.f32 %v485_v62, 0.0 }
 0x106   :  { %v377_v8 = vpop.f32.mrf.mxu0  ;;  %v490_v9 = vpop.f32.mrf.mxu1 }
 0x107   :  { %v564_v12 = vmax.f32 %v374_v4, 0.0  ;;  %v566_v13 = vmax.f32 %v487_v5, 0.0  ;;  %v623_v21 = vpack.c.bf16 %v563_v6, %v559_v14  ;;  %v625_v22 = vpack.c.bf16 %v565_v7, %v561_v15 }
 0x108   :  { %v379_v16 = vpop.f32.mrf.mxu0  ;;  %v492_v17 = vpop.f32.mrf.mxu1  ;;  %v378_v30 = vadd.f32 %v377_v8, %v2253_v53  ;;  %v491_v31 = vadd.f32 %v490_v9, %v2255_v54 }
 0x109   :  { %v624_v18 = vpack.c.bf16 %v564_v12, %v560_v10  ;;  %v626_v19 = vpack.c.bf16 %v566_v13, %v562_v11  ;;  %v380_v23 = vadd.f32 %v379_v16, %v2247_v51  ;;  %v493_v27 = vadd.f32 %v492_v17, %v2249_v52  ;;  %v1962_v11 = vld [vmem:[#allocation4 + $0x20] sm:$0xff]  }
 0x10a   :  { %v381_v24 = vpop.f32.mrf.mxu0  ;;  %v494_v25 = vpop.f32.mrf.mxu1  ;;  %v567_v48 = vmax.f32 %v378_v30, 0.0  ;;  %v569_v49 = vmax.f32 %v491_v31, 0.0 }
 0x10b   :  { %v382_v28 = vadd.f32 %v381_v24, %v2253_v53  ;;  %v495_v29 = vadd.f32 %v494_v25, %v2255_v54  ;;  %1083 = vmatprep.mubr.bf16.mxu0 %v624_v18  ;;  %1196 = vmatprep.mubr.bf16.mxu1 %v626_v19  ;;  %v568_v41 = vmax.f32 %v380_v23, 0.0  ;;  %v570_v42 = vmax.f32 %v493_v27, 0.0 }
 0x10c   :  { %v383_v32 = vpop.f32.mrf.mxu0  ;;  %v496_v33 = vpop.f32.mrf.mxu1  ;;  %1084 = vmatmul.mubr.bf16.vlgmr.msra.gmra.mxu0 %v623_v21  ;;  %1197 = vmatmul.mubr.bf16.vlgmr.msra.gmra.mxu1 %v625_v22 }
 0x10d   :  { %v384_v34 = vadd.f32 %v383_v32, %v2247_v51  ;;  %v497_v35 = vadd.f32 %v496_v33, %v2249_v52  ;;  %1717 = vmatpush3.bf16.msra.mxu0 %v1956_v20  ;;  %1788 = vmatpush3.bf16.msra.mxu1 %v1956_v20  ;;  %v571_v0 = vmax.f32 %v382_v28, 0.0  ;;  %v573_v37 = vmax.f32 %v495_v29, 0.0 }
 0x10e   :  { %v387_v38 = vpop.f32.mrf.mxu0  ;;  %v500_v39 = vpop.f32.mrf.mxu1  ;;  %1718 = vmatprep.subr.bf16.mxu0 %v1957_v26  ;;  %1781 = vmatprep.subr.bf16.mxu1 %v1957_v26 }
 0x10f   :  { %v572_v45 = vmax.f32 %v384_v34, 0.0  ;;  %v574_v47 = vmax.f32 %v497_v35, 0.0  ;;  %v627_v59 = vpack.c.bf16 %v571_v0, %v567_v48  ;;  %v629_v60 = vpack.c.bf16 %v573_v37, %v569_v49 }
 0x110   :  { %v389_v50 = vpop.f32.mrf.mxu0  ;;  %v502_v55 = vpop.f32.mrf.mxu1  ;;  %v388_v5 = vadd.f32 %v387_v38, %v2253_v53  ;;  %v501_v6 = vadd.f32 %v500_v39, %v2255_v54 }
 0x111   :  { %v628_v56 = vpack.c.bf16 %v572_v45, %v568_v41  ;;  %v630_v57 = vpack.c.bf16 %v574_v47, %v570_v42  ;;  %1719 = vmatpush3.bf16.msra.mxu0 %v1958_v36  ;;  %v390_v61 = vadd.f32 %v389_v50, %v2247_v51  ;;  %1789 = vmatpush3.bf16.msra.mxu1 %v1958_v36 }
 0x112   :  { %v391_v62 = vpop.f32.mrf.mxu0  ;;  %v504_v63 = vpop.f32.mrf.mxu1  ;;  %1720 = vmatprep.subr.bf16.mxu0 %v1959_v40  ;;  %v503_v2 = vadd.f32 %v502_v55, %v2249_v52  ;;  %1782 = vmatprep.subr.bf16.mxu1 %v1959_v40  ;;  %v575_v20 = vmax.f32 %v388_v5, 0.0  ;;  %v577_v21 = vmax.f32 %v501_v6, 0.0 }
 0x113   :  { %v392_v3 = vadd.f32 %v391_v62, %v2253_v53  ;;  %v505_v4 = vadd.f32 %v504_v63, %v2255_v54  ;;  %1093 = vmatprep.mubr.bf16.mxu0 %v628_v56  ;;  %1206 = vmatprep.mubr.bf16.mxu1 %v630_v57  ;;  %v576_v16 = vmax.f32 %v390_v61, 0.0 }
 0x114   :  { %v393_v7 = vpop.f32.mrf.mxu0  ;;  %v506_v8 = vpop.f32.mrf.mxu1  ;;  %1094 = vmatmul.mubr.bf16.gmra.mxu0 %v627_v59  ;;  %1207 = vmatmul.mubr.bf16.gmra.mxu1 %v629_v60  ;;  %v578_v17 = vmax.f32 %v503_v2, 0.0 }
 0x115   :  { %v394_v9 = vadd.f32 %v393_v7, %v2247_v51  ;;  %v507_v10 = vadd.f32 %v506_v8, %v2249_v52  ;;  %1721 = vmatpush3.bf16.msra.mxu0 %v1960_v58  ;;  %v579_v12 = vmax.f32 %v392_v3, 0.0  ;;  %v581_v13 = vmax.f32 %v505_v4, 0.0  ;;  %1790 = vmatpush3.bf16.msra.mxu1 %v1960_v58 }
 0x116   :  { %v397_v14 = vpop.f32.mrf.mxu0  ;;  %v510_v15 = vpop.f32.mrf.mxu1  ;;  %1722 = vmatprep.subr.bf16.mxu0 %v1961_v1  ;;  %1783 = vmatprep.subr.bf16.mxu1 %v1961_v1 }
 0x117   :  { %v580_v18 = vmax.f32 %v394_v9, 0.0  ;;  %v582_v19 = vmax.f32 %v507_v10, 0.0  ;;  %v631_v26 = vpack.c.bf16 %v579_v12, %v575_v20  ;;  %v633_v27 = vpack.c.bf16 %v581_v13, %v577_v21 }
 0x118   :  { %v399_v22 = vpop.f32.mrf.mxu0  ;;  %v512_v23 = vpop.f32.mrf.mxu1  ;;  %v398_v34 = vadd.f32 %v397_v14, %v2253_v53  ;;  %v511_v35 = vadd.f32 %v510_v15, %v2255_v54 }
 0x119   :  { %v632_v24 = vpack.c.bf16 %v580_v18, %v576_v16  ;;  %v634_v25 = vpack.c.bf16 %v582_v19, %v578_v17  ;;  %1723 = vmatpush3.bf16.msra.mxu0 %v1962_v11  ;;  %v400_v28 = vadd.f32 %v399_v22, %v2247_v51  ;;  %1791 = vmatpush3.bf16.msra.mxu1 %v1962_v11 }
 0x11a   :  { %v401_v29 = vpop.f32.mrf.mxu0  ;;  %v514_v30 = vpop.f32.mrf.mxu1  ;;  %v513_v31 = vadd.f32 %v512_v23, %v2249_v52  ;;  %v583_v50 = vmax.f32 %v398_v34, 0.0  ;;  %v585_v55 = vmax.f32 %v511_v35, 0.0 }
 0x11b   :  { %v402_v32 = vadd.f32 %v401_v29, %v2253_v53  ;;  %v515_v33 = vadd.f32 %v514_v30, %v2255_v54  ;;  %1103 = vmatprep.mubr.bf16.mxu0 %v632_v24  ;;  %1216 = vmatprep.mubr.bf16.mxu1 %v634_v25  ;;  %v584_v45 = vmax.f32 %v400_v28, 0.0 }
 0x11c   :  { %v403_v36 = vpop.f32.mrf.mxu0  ;;  %v516_v0 = vpop.f32.mrf.mxu1  ;;  %1104 = vmatmul.mubr.bf16.gmra.mxu0 %v631_v26  ;;  %1217 = vmatmul.mubr.bf16.gmra.mxu1 %v633_v27  ;;  %v586_v47 = vmax.f32 %v513_v31, 0.0 }
 0x11d   :  { %v404_v37 = vadd.f32 %v403_v36, %v2247_v51  ;;  %v517_v38 = vadd.f32 %v516_v0, %v2249_v52  ;;  %v587_v39 = vmax.f32 %v402_v32, 0.0  ;;  %v589_v40 = vmax.f32 %v515_v33, 0.0 }
 0x11e   :  { %v407_v41 = vpop.f32.mrf.mxu0  ;;  %v520_v42 = vpop.f32.mrf.mxu1 }
 0x11f   :  { %v588_v48 = vmax.f32 %v404_v37, 0.0  ;;  %v590_v49 = vmax.f32 %v517_v38, 0.0  ;;  %v635_v60 = vpack.c.bf16 %v587_v39, %v583_v50  ;;  %v637_v61 = vpack.c.bf16 %v589_v40, %v585_v55 }
 0x120   :  { %v409_v56 = vpop.f32.mrf.mxu0  ;;  %v522_v57 = vpop.f32.mrf.mxu1  ;;  %v408_v5 = vadd.f32 %v407_v41, %v2253_v53  ;;  %v521_v6 = vadd.f32 %v520_v42, %v2255_v54 }
 0x121   :  { %v636_v58 = vpack.c.bf16 %v588_v48, %v584_v45  ;;  %v638_v59 = vpack.c.bf16 %v590_v49, %v586_v47  ;;  %v410_v62 = vadd.f32 %v409_v56, %v2247_v51  ;;  %v523_v2 = vadd.f32 %v522_v57, %v2249_v52 }
 0x122   :  { %v411_v63 = vpop.f32.mrf.mxu0  ;;  %v524_v1 = vpop.f32.mrf.mxu1  ;;  %v591_v19 = vmax.f32 %v408_v5, 0.0  ;;  %v593_v20 = vmax.f32 %v521_v6, 0.0 }
 0x123   :  { %v412_v3 = vadd.f32 %v411_v63, %v2253_v53  ;;  %v525_v4 = vadd.f32 %v524_v1, %v2255_v54  ;;  %1113 = vmatprep.mubr.bf16.mxu0 %v636_v58  ;;  %1226 = vmatprep.mubr.bf16.mxu1 %v638_v59  ;;  %v592_v15 = vmax.f32 %v410_v62, 0.0  ;;  %v594_v16 = vmax.f32 %v523_v2, 0.0 }
 0x124   :  { %v413_v7 = vpop.f32.mrf.mxu0  ;;  %v526_v8 = vpop.f32.mrf.mxu1  ;;  %1114 = vmatmul.mubr.bf16.gmra.mxu0 %v635_v60  ;;  %1227 = vmatmul.mubr.bf16.gmra.mxu1 %v637_v61 }
 0x125   :  { %v414_v9 = vadd.f32 %v413_v7, %v2247_v51  ;;  %v527_v10 = vadd.f32 %v526_v8, %v2249_v52  ;;  %v595_v11 = vmax.f32 %v412_v3, 0.0  ;;  %v597_v12 = vmax.f32 %v525_v4, 0.0 }
 0x126   :  { %v417_v13 = vpop.f32.mrf.mxu0  ;;  %v530_v14 = vpop.f32.mrf.mxu1 }
 0x127   :  { %v596_v17 = vmax.f32 %v414_v9, 0.0  ;;  %v598_v18 = vmax.f32 %v527_v10, 0.0  ;;  %v639_v25 = vpack.c.bf16 %v595_v11, %v591_v19  ;;  %v641_v26 = vpack.c.bf16 %v597_v12, %v593_v20 }
 0x128   :  { %v419_v21 = vpop.f32.mrf.mxu0  ;;  %v532_v22 = vpop.f32.mrf.mxu1  ;;  %v418_v33 = vadd.f32 %v417_v13, %v2253_v53  ;;  %v531_v34 = vadd.f32 %v530_v14, %v2255_v54 }
 0x129   :  { %v640_v23 = vpack.c.bf16 %v596_v17, %v592_v15  ;;  %v642_v24 = vpack.c.bf16 %v598_v18, %v594_v16  ;;  %v420_v27 = vadd.f32 %v419_v21, %v2247_v51  ;;  %v533_v30 = vadd.f32 %v532_v22, %v2249_v52 }
 0x12a   :  { %v421_v28 = vpop.f32.mrf.mxu0  ;;  %v534_v29 = vpop.f32.mrf.mxu1  ;;  %v599_v49 = vmax.f32 %v418_v33, 0.0  ;;  %v601_v50 = vmax.f32 %v531_v34, 0.0 }
 0x12b   :  { %v422_v31 = vadd.f32 %v421_v28, %v2253_v53  ;;  %v535_v32 = vadd.f32 %v534_v29, %v2255_v54  ;;  %1123 = vmatprep.mubr.bf16.mxu0 %v640_v23  ;;  %1236 = vmatprep.mubr.bf16.mxu1 %v642_v24  ;;  %v600_v42 = vmax.f32 %v420_v27, 0.0  ;;  %v602_v45 = vmax.f32 %v533_v30, 0.0 }
 0x12c   :  { %v423_v35 = vpop.f32.mrf.mxu0  ;;  %v536_v36 = vpop.f32.mrf.mxu1  ;;  %1124 = vmatmul.mubr.bf16.gmra.mxu0 %v639_v25  ;;  %1237 = vmatmul.mubr.bf16.gmra.mxu1 %v641_v26 }
 0x12d   :  { %v424_v0 = vadd.f32 %v423_v35, %v2247_v51  ;;  %v537_v37 = vadd.f32 %v536_v36, %v2249_v52  ;;  %v603_v38 = vmax.f32 %v422_v31, 0.0  ;;  %v605_v39 = vmax.f32 %v535_v32, 0.0 }
 0x12e   :  { %v427_v40 = vpop.f32.mrf.mxu0  ;;  %v540_v41 = vpop.f32.mrf.mxu1 }
 0x12f   :  { %v604_v47 = vmax.f32 %v424_v0, 0.0  ;;  %v606_v48 = vmax.f32 %v537_v37, 0.0  ;;  %v643_v59 = vpack.c.bf16 %v603_v38, %v599_v49  ;;  %v645_v60 = vpack.c.bf16 %v605_v39, %v601_v50  ;;  %v1963_v50 = vld [vmem:[#allocation4 + $0x58] sm:$0xff]  }
 0x130   :  { %v429_v55 = vpop.f32.mrf.mxu0  ;;  %v542_v56 = vpop.f32.mrf.mxu1  ;;  %v428_v4 = vadd.f32 %v427_v40, %v2253_v53  ;;  %v541_v5 = vadd.f32 %v540_v41, %v2255_v54  ;;  %1724 = vmatprep.subr.bf16.mxu0 %v1963_v50  ;;  %1784 = vmatprep.subr.bf16.mxu1 %v1963_v50 }
 0x131   :  { %v644_v57 = vpack.c.bf16 %v604_v47, %v600_v42  ;;  %v646_v58 = vpack.c.bf16 %v606_v48, %v602_v45  ;;  %v430_v61 = vadd.f32 %v429_v55, %v2247_v51  ;;  %v543_v1 = vadd.f32 %v542_v56, %v2249_v52  ;;  %v1966_v55 = vld [vmem:[#allocation4 + $0x10] sm:$0xff]   ;;  %v1967_v56 = vld [vmem:[#allocation4 + $0x48] sm:$0xff]  }
 0x132   :  { %v431_v62 = vpop.f32.mrf.mxu0  ;;  %v544_v63 = vpop.f32.mrf.mxu1  ;;  %v607_v18 = vmax.f32 %v428_v4, 0.0  ;;  %v609_v19 = vmax.f32 %v541_v5, 0.0 }
 0x133   :  { %v432_v2 = vadd.f32 %v431_v62, %v2253_v53  ;;  %v545_v3 = vadd.f32 %v544_v63, %v2255_v54  ;;  %1133 = vmatprep.mubr.bf16.mxu0 %v644_v57  ;;  %1246 = vmatprep.mubr.bf16.mxu1 %v646_v58  ;;  %v608_v14 = vmax.f32 %v430_v61, 0.0  ;;  %v610_v15 = vmax.f32 %v543_v1, 0.0  ;;  %v1968_v57 = vld [vmem:[#allocation4 + $0x8] sm:$0xff]   ;;  %v1969_v58 = vld [vmem:[#allocation4 + $0x40] sm:$0xff]  }
 0x134   :  { %v433_v6 = vpop.f32.mrf.mxu0  ;;  %v546_v7 = vpop.f32.mrf.mxu1  ;;  %1134 = vmatmul.mubr.bf16.gmra.mxu0 %v643_v59  ;;  %1247 = vmatmul.mubr.bf16.gmra.mxu1 %v645_v60  ;;  %v1970_v59 = vld [vmem:[#allocation4] sm:$0xff]  }
 0x135   :  { %v434_v8 = vadd.f32 %v433_v6, %v2247_v51  ;;  %v547_v9 = vadd.f32 %v546_v7, %v2249_v52  ;;  %v611_v10 = vmax.f32 %v432_v2, 0.0  ;;  %v613_v11 = vmax.f32 %v545_v3, 0.0  ;;  %v719_v60 = vld [vmem:[%s2437_s4] sm:$0x3] }
 0x136   :  { %v437_v12 = vpop.f32.mrf.mxu0  ;;  %v550_v13 = vpop.f32.mrf.mxu1  ;;  %v2326_v61 = vrot.slane %v719_v60, %v111_v44  ;;  %v2330_v62 = vrot.slane %v719_v60, %v107_v46 }
 0x137   :  { %v612_v16 = vmax.f32 %v434_v8, 0.0  ;;  %v614_v17 = vmax.f32 %v547_v9, 0.0  ;;  %v647_v24 = vpack.c.bf16 %v611_v10, %v607_v18  ;;  %v649_v25 = vpack.c.bf16 %v613_v11, %v609_v19 }
 0x138   :  { %v439_v20 = vpop.f32.mrf.mxu0  ;;  %v552_v21 = vpop.f32.mrf.mxu1  ;;  %v438_v32 = vadd.f32 %v437_v12, %v2253_v53  ;;  %v551_v33 = vadd.f32 %v550_v13, %v2255_v54 }
 0x139   :  { %v648_v22 = vpack.c.bf16 %v612_v16, %v608_v14  ;;  %v650_v23 = vpack.c.bf16 %v614_v17, %v610_v15  ;;  %v440_v26 = vadd.f32 %v439_v20, %v2247_v51  ;;  %v553_v29 = vadd.f32 %v552_v21, %v2249_v52 }
 0x13a   :  { %v441_v27 = vpop.f32.mrf.mxu0  ;;  %v554_v28 = vpop.f32.mrf.mxu1  ;;  %v615_v45 = vmax.f32 %v438_v32, 0.0  ;;  %v617_v47 = vmax.f32 %v551_v33, 0.0 }
 0x13b   :  { %v442_v30 = vadd.f32 %v441_v27, %v2253_v53  ;;  %v555_v31 = vadd.f32 %v554_v28, %v2255_v54  ;;  %1143 = vmatprep.mubr.bf16.mxu0 %v648_v22  ;;  %1256 = vmatprep.mubr.bf16.mxu1 %v650_v23  ;;  %v616_v39 = vmax.f32 %v440_v26, 0.0  ;;  %v618_v40 = vmax.f32 %v553_v29, 0.0 }
 0x13c   :  { %v443_v34 = vpop.f32.mrf.mxu0  ;;  %v556_v35 = vpop.f32.mrf.mxu1  ;;  %1144 = vmatmul.mubr.bf16.gmra.mxu0 %v647_v24  ;;  %1257 = vmatmul.mubr.bf16.gmra.mxu1 %v649_v25 }
 0x13d   :  { %v444_v36 = vadd.f32 %v443_v34, %v2247_v51  ;;  %v557_v0 = vadd.f32 %v556_v35, %v2249_v52  ;;  %v619_v37 = vmax.f32 %v442_v30, 0.0  ;;  %v621_v38 = vmax.f32 %v555_v31, 0.0  ;;  %v1964_v51 = vld [vmem:[#allocation4 + $0x18] sm:$0xff]   ;;  %v1965_v52 = vld [vmem:[#allocation4 + $0x50] sm:$0xff]  }
 0x13e   :  { %1725 = vmatpush3.bf16.msra.mxu0 %v1964_v51  ;;  %1792 = vmatpush3.bf16.msra.mxu1 %v1964_v51 }
 0x13f   :  { %v620_v41 = vmax.f32 %v444_v36, 0.0  ;;  %v622_v42 = vmax.f32 %v557_v0, 0.0  ;;  %v651_v49 = vpack.c.bf16 %v619_v37, %v615_v45  ;;  %v653_v54 = vpack.c.bf16 %v621_v38, %v617_v47  ;;  %1726 = vmatprep.subr.bf16.mxu0 %v1965_v52  ;;  %1785 = vmatprep.subr.bf16.mxu1 %v1965_v52 }
 0x141   :  { %v652_v48 = vpack.c.bf16 %v620_v41, %v616_v39  ;;  %v654_v53 = vpack.c.bf16 %v622_v42, %v618_v40 }
 0x142   :  { %1727 = vmatpush3.bf16.msra.mxu0 %v1966_v55  ;;  %1793 = vmatpush3.bf16.msra.mxu1 %v1966_v55 }
 0x143   :  { %1153 = vmatprep.mubr.bf16.mxu0 %v652_v48  ;;  %1266 = vmatprep.mubr.bf16.mxu1 %v654_v53 }
 0x144   :  { %1154 = vmatmul.mubr.bf16.gmra.mxu0 %v651_v49  ;;  %1267 = vmatmul.mubr.bf16.gmra.mxu1 %v653_v54 }
 0x145   :  { %1728 = vmatprep.subr.bf16.mxu0 %v1967_v56  ;;  %1786 = vmatprep.subr.bf16.mxu1 %v1967_v56 }
 0x146   :  { %1729 = vmatpush3.bf16.msra.mxu0 %v1968_v57  ;;  %1794 = vmatpush3.bf16.msra.mxu1 %v1968_v57 }
 0x147   :  { %1730 = vmatprep.subr.bf16.mxu0 %v1969_v58  ;;  %1787 = vmatprep.subr.bf16.mxu1 %v1969_v58 }
 0x14a   :  { %1731 = vmatpush3.bf16.msra.mxu0 %v1970_v59  ;;  %1795 = vmatpush3.bf16.msra.mxu1 %v1970_v59 }
 0x1cc   :  { %v1085_v63 = vpop.f32.mrf.mxu0  ;;  %v1198_v1 = vpop.f32.mrf.mxu1 }
 0x1cd   :  { %v1086_v5 = vadd.f32 %v1085_v63, %v2330_v62 }
 0x1ce   :  { %v1087_v2 = vpop.f32.mrf.mxu0  ;;  %v1200_v3 = vpop.f32.mrf.mxu1 }
 0x1cf   :  { %v1088_v4 = vadd.f32 %v1087_v2, %v2326_v61  ;;  %v1199_v46 = vadd.f32 %v1198_v1, %v1086_v5 }
 0x1d0   :  { %v1089_v6 = vpop.f32.mrf.mxu0  ;;  %v1202_v7 = vpop.f32.mrf.mxu1 }
 0x1d1   :  { %v1090_v8 = vadd.f32 %v1089_v6, %v2330_v62  ;;  %v1201_v44 = vadd.f32 %v1200_v3, %v1088_v4  ;;  %v1277_v21 = vmax.f32 %v1199_v46, 0.0 }
 0x1d2   :  { %v1091_v9 = vpop.f32.mrf.mxu0  ;;  %v1204_v10 = vpop.f32.mrf.mxu1 }
 0x1d3   :  { %v1203_v11 = vadd.f32 %v1202_v7, %v1090_v8  ;;  %v1092_v43 = vadd.f32 %v1091_v9, %v2326_v61  ;;  %v1278_v18 = vmax.f32 %v1201_v44, 0.0 }
 0x1d4   :  { %v1095_v12 = vpop.f32.mrf.mxu0  ;;  %v1208_v13 = vpop.f32.mrf.mxu1 }
 0x1d5   :  { %v1205_v14 = vadd.f32 %v1204_v10, %v1092_v43  ;;  %v1279_v15 = vmax.f32 %v1203_v11, 0.0  ;;  %v1096_v22 = vadd.f32 %v1095_v12, %v2330_v62 }
 0x1d6   :  { %v1097_v16 = vpop.f32.mrf.mxu0  ;;  %v1210_v17 = vpop.f32.mrf.mxu1 }
 0x1d7   :  { %v1280_v19 = vmax.f32 %v1205_v14, 0.0  ;;  %v1098_v20 = vadd.f32 %v1097_v16, %v2326_v61  ;;  %v1309_v27 = vpack.c.bf16 %v1279_v15, %v1277_v21  ;;  %v1209_v33 = vadd.f32 %v1208_v13, %v1096_v22 }
 0x1d8   :  { %v1099_v23 = vpop.f32.mrf.mxu0  ;;  %v1212_v24 = vpop.f32.mrf.mxu1 }
 0x1d9   :  { %v1310_v25 = vpack.c.bf16 %v1280_v19, %v1278_v18  ;;  %v1100_v26 = vadd.f32 %v1099_v23, %v2330_v62  ;;  %v1211_v30 = vadd.f32 %v1210_v17, %v1098_v20  ;;  %v1281_v42 = vmax.f32 %v1209_v33, 0.0 }
 0x1da   :  { %v1101_v28 = vpop.f32.mrf.mxu0  ;;  %v1214_v29 = vpop.f32.mrf.mxu1 }
 0x1db   :  { %v1213_v31 = vadd.f32 %v1212_v24, %v1100_v26  ;;  %v1102_v32 = vadd.f32 %v1101_v28, %v2326_v61  ;;  %1492 = vmatprep.mubr.bf16.mxu0 %v1310_v25  ;;  %v1282_v39 = vmax.f32 %v1211_v30, 0.0 }
 0x1dc   :  { %v1105_v34 = vpop.f32.mrf.mxu0  ;;  %v1218_v35 = vpop.f32.mrf.mxu1  ;;  %1493 = vmatmul.mubr.bf16.vlgmr.msra.gmra.mxu0 %v1309_v27 }
 0x1dd   :  { %v1215_v36 = vadd.f32 %v1214_v29, %v1102_v32  ;;  %v1283_v0 = vmax.f32 %v1213_v31, 0.0  ;;  %v1106_v45 = vadd.f32 %v1105_v34, %v2330_v62 }
 0x1de   :  { %v1107_v37 = vpop.f32.mrf.mxu0  ;;  %v1220_v38 = vpop.f32.mrf.mxu1 }
 0x1df   :  { %v1284_v40 = vmax.f32 %v1215_v36, 0.0  ;;  %v1108_v41 = vadd.f32 %v1107_v37, %v2326_v61  ;;  %v1311_v54 = vpack.c.bf16 %v1283_v0, %v1281_v42  ;;  %v1219_v57 = vadd.f32 %v1218_v35, %v1106_v45 }
 0x1e0   :  { %v1109_v47 = vpop.f32.mrf.mxu0  ;;  %v1222_v48 = vpop.f32.mrf.mxu1 }
 0x1e1   :  { %v1312_v53 = vpack.c.bf16 %v1284_v40, %v1282_v39  ;;  %v1110_v49 = vadd.f32 %v1109_v47, %v2330_v62  ;;  %v1221_v52 = vadd.f32 %v1220_v38, %v1108_v41  ;;  %v1285_v6 = vmax.f32 %v1219_v57, 0.0 }
 0x1e2   :  { %v1111_v50 = vpop.f32.mrf.mxu0  ;;  %v1224_v51 = vpop.f32.mrf.mxu1 }
 0x1e3   :  { %v1223_v55 = vadd.f32 %v1222_v48, %v1110_v49  ;;  %v1112_v56 = vadd.f32 %v1111_v50, %v2326_v61  ;;  %1500 = vmatprep.mubr.bf16.mxu0 %v1312_v53  ;;  %v1286_v3 = vmax.f32 %v1221_v52, 0.0 }
 0x1e4   :  { %v1115_v58 = vpop.f32.mrf.mxu0  ;;  %v1228_v59 = vpop.f32.mrf.mxu1  ;;  %1501 = vmatmul.mubr.bf16.gmra.mxu0 %v1311_v54 }
 0x1e5   :  { %v1225_v60 = vadd.f32 %v1224_v51, %v1112_v56  ;;  %v1287_v63 = vmax.f32 %v1223_v55, 0.0  ;;  %v1116_v7 = vadd.f32 %v1115_v58, %v2330_v62 }
 0x1e6   :  { %v1117_v1 = vpop.f32.mrf.mxu0  ;;  %v1230_v2 = vpop.f32.mrf.mxu1 }
 0x1e7   :  { %v1288_v4 = vmax.f32 %v1225_v60, 0.0  ;;  %v1118_v5 = vadd.f32 %v1117_v1, %v2326_v61  ;;  %v1313_v11 = vpack.c.bf16 %v1287_v63, %v1285_v6  ;;  %v1229_v15 = vadd.f32 %v1228_v59, %v1116_v7 }
 0x1e8   :  { %v1119_v8 = vpop.f32.mrf.mxu0  ;;  %v1232_v9 = vpop.f32.mrf.mxu1 }
 0x1e9   :  { %v1314_v10 = vpack.c.bf16 %v1288_v4, %v1286_v3  ;;  %v1120_v44 = vadd.f32 %v1119_v8, %v2330_v62  ;;  %v1231_v12 = vadd.f32 %v1230_v2, %v1118_v5  ;;  %v1289_v25 = vmax.f32 %v1229_v15, 0.0 }
 0x1ea   :  { %v1121_v43 = vpop.f32.mrf.mxu0  ;;  %v1234_v46 = vpop.f32.mrf.mxu1 }
 0x1eb   :  { %v1233_v13 = vadd.f32 %v1232_v9, %v1120_v44  ;;  %v1122_v14 = vadd.f32 %v1121_v43, %v2326_v61  ;;  %1508 = vmatprep.mubr.bf16.mxu0 %v1314_v10  ;;  %v1290_v22 = vmax.f32 %v1231_v12, 0.0 }
 0x1ec   :  { %v1125_v16 = vpop.f32.mrf.mxu0  ;;  %v1238_v17 = vpop.f32.mrf.mxu1  ;;  %1509 = vmatmul.mubr.bf16.gmra.mxu0 %v1313_v11 }
 0x1ed   :  { %v1235_v18 = vadd.f32 %v1234_v46, %v1122_v14  ;;  %v1291_v19 = vmax.f32 %v1233_v13, 0.0  ;;  %v1126_v26 = vadd.f32 %v1125_v16, %v2330_v62 }
 0x1ee   :  { %v1127_v20 = vpop.f32.mrf.mxu0  ;;  %v1240_v21 = vpop.f32.mrf.mxu1 }
 0x1ef   :  { %v1292_v23 = vmax.f32 %v1235_v18, 0.0  ;;  %v1128_v24 = vadd.f32 %v1127_v20, %v2326_v61  ;;  %v1315_v31 = vpack.c.bf16 %v1291_v19, %v1289_v25  ;;  %v1239_v0 = vadd.f32 %v1238_v17, %v1126_v26 }
 0x1f0   :  { %v1129_v27 = vpop.f32.mrf.mxu0  ;;  %v1242_v28 = vpop.f32.mrf.mxu1 }
 0x1f1   :  { %v1316_v29 = vpack.c.bf16 %v1292_v23, %v1290_v22  ;;  %v1130_v30 = vadd.f32 %v1129_v27, %v2330_v62  ;;  %v1241_v34 = vadd.f32 %v1240_v21, %v1128_v24  ;;  %v1293_v53 = vmax.f32 %v1239_v0, 0.0 }
 0x1f2   :  { %v1131_v32 = vpop.f32.mrf.mxu0  ;;  %v1244_v33 = vpop.f32.mrf.mxu1 }
 0x1f3   :  { %v1243_v35 = vadd.f32 %v1242_v28, %v1130_v30  ;;  %v1132_v36 = vadd.f32 %v1131_v32, %v2326_v61  ;;  %1516 = vmatprep.mubr.bf16.mxu0 %v1316_v29  ;;  %v1294_v45 = vmax.f32 %v1241_v34, 0.0 }
 0x1f4   :  { %v1135_v37 = vpop.f32.mrf.mxu0  ;;  %v1248_v38 = vpop.f32.mrf.mxu1  ;;  %1517 = vmatmul.mubr.bf16.gmra.mxu0 %v1315_v31 }
 0x1f5   :  { %v1245_v39 = vadd.f32 %v1244_v33, %v1132_v36  ;;  %v1295_v40 = vmax.f32 %v1243_v35, 0.0  ;;  %v1136_v49 = vadd.f32 %v1135_v37, %v2330_v62 }
 0x1f6   :  { %v1137_v41 = vpop.f32.mrf.mxu0  ;;  %v1250_v42 = vpop.f32.mrf.mxu1 }
 0x1f7   :  { %v1296_v47 = vmax.f32 %v1245_v39, 0.0  ;;  %v1138_v48 = vadd.f32 %v1137_v41, %v2326_v61  ;;  %v1317_v55 = vpack.c.bf16 %v1295_v40, %v1293_v53  ;;  %v1249_v63 = vadd.f32 %v1248_v38, %v1136_v49 }
 0x1f8   :  { %v1139_v54 = vpop.f32.mrf.mxu0  ;;  %v1252_v50 = vpop.f32.mrf.mxu1 }
 0x1f9   :  { %v1318_v51 = vpack.c.bf16 %v1296_v47, %v1294_v45  ;;  %v1140_v52 = vadd.f32 %v1139_v54, %v2330_v62  ;;  %v1251_v58 = vadd.f32 %v1250_v42, %v1138_v48  ;;  %v1297_v10 = vmax.f32 %v1249_v63, 0.0  ;;  %v2367_v54 = vld [vmem:[%s2439_s6] ss:$0 sm:$0xff] }
 0x1fa   :  { %v1141_v56 = vpop.f32.mrf.mxu0  ;;  %v1254_v57 = vpop.f32.mrf.mxu1 }
 0x1fb   :  { %v1253_v59 = vadd.f32 %v1252_v50, %v1140_v52  ;;  %v1142_v60 = vadd.f32 %v1141_v56, %v2326_v61  ;;  %1524 = vmatprep.mubr.bf16.mxu1 %v1318_v51  ;;  %v1298_v7 = vmax.f32 %v1251_v58, 0.0 }
 0x1fc   :  { %v1145_v1 = vpop.f32.mrf.mxu0  ;;  %v1258_v2 = vpop.f32.mrf.mxu1  ;;  %1525 = vmatmul.mubr.bf16.vlgmr.msra.gmra.mxu1 %v1317_v55 }
 0x1fd   :  { %v1255_v3 = vadd.f32 %v1254_v57, %v1142_v60  ;;  %v1299_v4 = vmax.f32 %v1253_v59, 0.0  ;;  %v1146_v44 = vadd.f32 %v1145_v1, %v2330_v62 }
 0x1fe   :  { %v1147_v5 = vpop.f32.mrf.mxu0  ;;  %v1260_v6 = vpop.f32.mrf.mxu1 }
 0x1ff   :  { %v1300_v8 = vmax.f32 %v1255_v3, 0.0  ;;  %v1148_v9 = vadd.f32 %v1147_v5, %v2326_v61  ;;  %v1319_v13 = vpack.c.bf16 %v1299_v4, %v1297_v10  ;;  %v1259_v19 = vadd.f32 %v1258_v2, %v1146_v44 }
 0x200   :  { %v1149_v11 = vpop.f32.mrf.mxu0  ;;  %v1262_v43 = vpop.f32.mrf.mxu1 }
 0x201   :  { %v1320_v46 = vpack.c.bf16 %v1300_v8, %v1298_v7  ;;  %v1150_v12 = vadd.f32 %v1149_v11, %v2330_v62  ;;  %v1261_v16 = vadd.f32 %v1260_v6, %v1148_v9  ;;  %v1301_v29 = vmax.f32 %v1259_v19, 0.0 }
 0x202   :  { %v1151_v14 = vpop.f32.mrf.mxu0  ;;  %v1264_v15 = vpop.f32.mrf.mxu1 }
 0x203   :  { %v1263_v17 = vadd.f32 %v1262_v43, %v1150_v12  ;;  %v1152_v18 = vadd.f32 %v1151_v14, %v2326_v61  ;;  %1532 = vmatprep.mubr.bf16.mxu1 %v1320_v46  ;;  %v1302_v26 = vmax.f32 %v1261_v16, 0.0 }
 0x204   :  { %v1155_v20 = vpop.f32.mrf.mxu0  ;;  %v1268_v21 = vpop.f32.mrf.mxu1  ;;  %1533 = vmatmul.mubr.bf16.gmra.mxu1 %v1319_v13 }
 0x205   :  { %v1265_v22 = vadd.f32 %v1264_v15, %v1152_v18  ;;  %v1303_v23 = vmax.f32 %v1263_v17, 0.0  ;;  %v1156_v30 = vadd.f32 %v1155_v20, %v2330_v62 }
 0x206   :  { %v1157_v24 = vpop.f32.mrf.mxu0  ;;  %v1270_v25 = vpop.f32.mrf.mxu1 }
 0x207   :  { %v1304_v27 = vmax.f32 %v1265_v22, 0.0  ;;  %v1158_v28 = vadd.f32 %v1157_v24, %v2326_v61  ;;  %v1321_v35 = vpack.c.bf16 %v1303_v23, %v1301_v29  ;;  %v1269_v39 = vadd.f32 %v1268_v21, %v1156_v30 }
 0x208   :  { %v1159_v31 = vpop.f32.mrf.mxu0  ;;  %v1272_v32 = vpop.f32.mrf.mxu1 }
 0x209   :  { %v1322_v33 = vpack.c.bf16 %v1304_v27, %v1302_v26  ;;  %v1160_v34 = vadd.f32 %v1159_v31, %v2330_v62  ;;  %v1271_v0 = vadd.f32 %v1270_v25, %v1158_v28  ;;  %v1305_v48 = vmax.f32 %v1269_v39, 0.0 }
 0x20a   :  { %v1161_v36 = vpop.f32.mrf.mxu0  ;;  %v1274_v40 = vpop.f32.mrf.mxu1 }
 0x20b   :  { %v1273_v37 = vadd.f32 %v1272_v32, %v1160_v34  ;;  %v1162_v38 = vadd.f32 %v1161_v36, %v2326_v61  ;;  %1540 = vmatprep.mubr.bf16.mxu1 %v1322_v33  ;;  %v1306_v45 = vmax.f32 %v1271_v0, 0.0 }
 0x20c   :  { %1541 = vmatmul.mubr.bf16.gmra.mxu1 %v1321_v35 }
 0x20d   :  { %v1275_v41 = vadd.f32 %v1274_v40, %v1162_v38  ;;  %v1307_v42 = vmax.f32 %v1273_v37, 0.0 }
 0x20f   :  { %v1308_v47 = vmax.f32 %v1275_v41, 0.0  ;;  %v1323_v49 = vpack.c.bf16 %v1307_v42, %v1305_v48 }
 0x211   :  { %v1324_v53 = vpack.c.bf16 %v1308_v47, %v1306_v45 }
 0x213   :  { %1548 = vmatprep.mubr.bf16.mxu1 %v1324_v53 }
 0x214   :  { %1549 = vmatmul.mubr.bf16.gmra.mxu1 %v1323_v49 }
 0x29c   :  { %v1732_v62 = vpop.f32.mrf.mxu0 }
 0x29e   :  { %v1733_v61 = vpop.f32.mrf.mxu0 }
 0x29f   :  { %v1734_v50 = vadd.f32 %v1733_v61, %v1732_v62 }
 0x2a0   :  { %v1735_v51 = vpop.f32.mrf.mxu0 }
 0x2a1   :  { %v1495_v52 = vadd.f32 %v1734_v50, %v2367_v54 }
 0x2a2   :  { %v1736_v55 = vpop.f32.mrf.mxu0 }
 0x2a3   :  { %1971 = vtanh.f32 %v1495_v52  ;;  %v1737_v56 = vadd.f32 %v1736_v55, %v1735_v51 }
 0x2a4   :  { %v1738_v57 = vpop.f32.mrf.mxu0 }
 0x2a5   :  { %v1498_v58 = vadd.f32 %v1737_v56, %v2367_v54 }
 0x2a6   :  { %v1739_v59 = vpop.f32.mrf.mxu0 }
 0x2a7   :  { %1973 = vtanh.f32 %v1498_v58  ;;  %v1740_v60 = vadd.f32 %v1739_v59, %v1738_v57 }
 0x2a8   :  { %v1741_v63 = vpop.f32.mrf.mxu0 }
 0x2a9   :  { %v1503_v1 = vadd.f32 %v1740_v60, %v2367_v54 }
 0x2aa   :  { %v1742_v2 = vpop.f32.mrf.mxu0 }
 0x2ab   :  { %1975 = vtanh.f32 %v1503_v1  ;;  %v1743_v3 = vadd.f32 %v1742_v2, %v1741_v63 }
 0x2ac   :  { %v1744_v4 = vpop.f32.mrf.mxu0 }
 0x2ad   :  { %v1506_v5 = vadd.f32 %v1743_v3, %v2367_v54 }
 0x2ae   :  { %v1745_v6 = vpop.f32.mrf.mxu0 }
 0x2af   :  { %1977 = vtanh.f32 %v1506_v5  ;;  %v1746_v7 = vadd.f32 %v1745_v6, %v1744_v4 }
 0x2b0   :  { %v1972_v8 = vpop.eup %1971  ;;  %v1747_v9 = vpop.f32.mrf.mxu0 }
 0x2b1   :  { %1573 = vst [vmem:[%s2440_s7] sm:$0xff] %v1972_v8  ;;  %v1511_v10 = vadd.f32 %v1746_v7, %v2367_v54 }
 0x2b2   :  { %v1748_v44 = vpop.f32.mrf.mxu0 }
 0x2b3   :  { %1979 = vtanh.f32 %v1511_v10  ;;  %v1749_v11 = vadd.f32 %v1748_v44, %v1747_v9 }
 0x2b4   :  { %v1974_v43 = vpop.eup %1973  ;;  %v1750_v46 = vpop.f32.mrf.mxu0 }
 0x2b5   :  { %1574 = vst [vmem:[%s2440_s7 + $0x8] sm:$0xff] %v1974_v43  ;;  %v1514_v12 = vadd.f32 %v1749_v11, %v2367_v54 }
 0x2b6   :  { %v1751_v13 = vpop.f32.mrf.mxu0 }
 0x2b7   :  { %1981 = vtanh.f32 %v1514_v12  ;;  %v1752_v14 = vadd.f32 %v1751_v13, %v1750_v46 }
 0x2b8   :  { %v1976_v15 = vpop.eup %1975  ;;  %v1753_v16 = vpop.f32.mrf.mxu0 }
 0x2b9   :  { %1575 = vst [vmem:[%s2440_s7 + $0x10] sm:$0xff] %v1976_v15  ;;  %v1519_v17 = vadd.f32 %v1752_v14, %v2367_v54 }
 0x2ba   :  { %v1754_v18 = vpop.f32.mrf.mxu0 }
 0x2bb   :  { %1983 = vtanh.f32 %v1519_v17  ;;  %v1755_v19 = vadd.f32 %v1754_v18, %v1753_v16 }
 0x2bc   :  { %v1978_v20 = vpop.eup %1977  ;;  %v1756_v21 = vpop.f32.mrf.mxu1 }
 0x2bd   :  { %1576 = vst [vmem:[%s2440_s7 + $0x18] sm:$0xff] %v1978_v20  ;;  %v1522_v22 = vadd.f32 %v1755_v19, %v2367_v54 }
 0x2be   :  { %v1757_v23 = vpop.f32.mrf.mxu1 }
 0x2bf   :  { %1985 = vtanh.f32 %v1522_v22  ;;  %v1758_v24 = vadd.f32 %v1757_v23, %v1756_v21 }
 0x2c0   :  { %v1980_v25 = vpop.eup %1979  ;;  %v1759_v26 = vpop.f32.mrf.mxu1 }
 0x2c1   :  { %1577 = vst [vmem:[%s2440_s7 + $0x20] sm:$0xff] %v1980_v25  ;;  %v1527_v27 = vadd.f32 %v1758_v24, %v2367_v54 }
 0x2c2   :  { %v1760_v28 = vpop.f32.mrf.mxu1 }
 0x2c3   :  { %1987 = vtanh.f32 %v1527_v27  ;;  %v1761_v29 = vadd.f32 %v1760_v28, %v1759_v26 }
 0x2c4   :  { %v1982_v30 = vpop.eup %1981  ;;  %v1762_v31 = vpop.f32.mrf.mxu1 }
 0x2c5   :  { %1578 = vst [vmem:[%s2440_s7 + $0x28] sm:$0xff] %v1982_v30  ;;  %v1530_v32 = vadd.f32 %v1761_v29, %v2367_v54 }
 0x2c6   :  { %v1763_v33 = vpop.f32.mrf.mxu1 }
 0x2c7   :  { %1989 = vtanh.f32 %v1530_v32  ;;  %v1764_v34 = vadd.f32 %v1763_v33, %v1762_v31 }
 0x2c8   :  { %v1984_v35 = vpop.eup %1983  ;;  %v1765_v36 = vpop.f32.mrf.mxu1 }
 0x2c9   :  { %1579 = vst [vmem:[%s2440_s7 + $0x30] sm:$0xff] %v1984_v35  ;;  %v1535_v0 = vadd.f32 %v1764_v34, %v2367_v54 }
 0x2ca   :  { %v1766_v37 = vpop.f32.mrf.mxu1 }
 0x2cb   :  { %1991 = vtanh.f32 %v1535_v0  ;;  %v1767_v38 = vadd.f32 %v1766_v37, %v1765_v36 }
 0x2cc   :  { %v1986_v39 = vpop.eup %1985  ;;  %v1768_v40 = vpop.f32.mrf.mxu1 }
 0x2cd   :  { %1580 = vst [vmem:[%s2440_s7 + $0x38] sm:$0xff] %v1986_v39  ;;  %v1538_v41 = vadd.f32 %v1767_v38, %v2367_v54 }
 0x2ce   :  { %v1769_v42 = vpop.f32.mrf.mxu1 }
 0x2cf   :  { %1993 = vtanh.f32 %v1538_v41  ;;  %v1770_v45 = vadd.f32 %v1769_v42, %v1768_v40 }
 0x2d0   :  { %v1988_v47 = vpop.eup %1987  ;;  %v1771_v48 = vpop.f32.mrf.mxu1 }
 0x2d1   :  { %1581 = vst [vmem:[%s2440_s7 + $0x40] sm:$0xff] %v1988_v47  ;;  %v1543_v53 = vadd.f32 %v1770_v45, %v2367_v54 }
 0x2d2   :  { %v1772_v49 = vpop.f32.mrf.mxu1 }
 0x2d3   :  { %1995 = vtanh.f32 %v1543_v53  ;;  %v1773_v62 = vadd.f32 %v1772_v49, %v1771_v48 }
 0x2d4   :  { %v1990_v61 = vpop.eup %1989  ;;  %v1774_v50 = vpop.f32.mrf.mxu1 }
 0x2d5   :  { %1582 = vst [vmem:[%s2440_s7 + $0x48] sm:$0xff] %v1990_v61  ;;  %v1546_v51 = vadd.f32 %v1773_v62, %v2367_v54 }
 0x2d6   :  { %v1775_v52 = vpop.f32.mrf.mxu1 }
 0x2d7   :  { %1997 = vtanh.f32 %v1546_v51  ;;  %v1776_v55 = vadd.f32 %v1775_v52, %v1774_v50 }
 0x2d8   :  { %v1992_v56 = vpop.eup %1991  ;;  %v1777_v57 = vpop.f32.mrf.mxu1 }
 0x2d9   :  { %1583 = vst [vmem:[%s2440_s7 + $0x50] sm:$0xff] %v1992_v56  ;;  %v1551_v58 = vadd.f32 %v1776_v55, %v2367_v54 }
 0x2da   :  { %v1778_v59 = vpop.f32.mrf.mxu1 }
 0x2db   :  { %1999 = vtanh.f32 %v1551_v58  ;;  %v1779_v60 = vadd.f32 %v1778_v59, %v1777_v57 }
 0x2dc   :  { %v1994_v63 = vpop.eup %1993 }
 0x2dd   :  { %1584 = vst [vmem:[%s2440_s7 + $0x58] sm:$0xff] %v1994_v63  ;;  %v1554_v1 = vadd.f32 %v1779_v60, %v2367_v54 }
 0x2df   :  { %2001 = vtanh.f32 %v1554_v1 }
 0x2e0   :  { %v1996_v2 = vpop.eup %1995 }
 0x2e1   :  { %1585 = vst [vmem:[%s2440_s7 + $0x60] sm:$0xff] %v1996_v2 }
 0x2e4   :  { %v1998_v3 = vpop.eup %1997 }
 0x2e5   :  { %1586 = vst [vmem:[%s2440_s7 + $0x68] sm:$0xff] %v1998_v3 }
 0x2e8   :  { %v2000_v4 = vpop.eup %1999 }
 0x2e9   :  { %1587 = vst [vmem:[%s2440_s7 + $0x70] sm:$0xff] %v2000_v4 }
 0x2ec   :  { %v2002_v5 = vpop.eup %2001 }
 0x2ed   :  { %1588 = vst [vmem:[%s2440_s7 + $0x78] sm:$0xff] %v2002_v5 }
 0x2ee   :  { %1593 = vsyncpa [#allocation3], 1 }
 0x2ef   :  { %1594 = vsyncpa [#allocation5], 1 }

</bundles_post_ra>
